<compile_context>
chip_gen: v7x
topology: tpu7x:2x2x1
jax: 0.10.0
libtpu: 0.0.40
codegen_flags: <defaults>
</compile_context>

<pallas_src>
import functools

import jax
import jax.numpy as jnp
from jax.experimental import pallas as pl
from jax.experimental.pallas import tpu as pltpu


def _round_up(x, m):
    return ((x + m - 1) // m) * m


def _make_ffn_kernel(use_scratch, exact_gelu):
    def kernel(x_ref, w1_ref, b1_ref, w2_ref, b2_ref, o_ref, *scratch):
        # x_ref: (tm, Dp), w1_ref: (Dp, th), b1_ref: (1, th),
        # w2_ref: (th, Dp), b2_ref: (1, Dp), o_ref: (tm, Dp),
        # scratch (optional): (tm, Dp) f32 accumulator when o_ref is not f32.
        acc = scratch[0] if use_scratch else o_ref
        h_idx = pl.program_id(1)

        @pl.when(h_idx == 0)
        def _init():
            acc[...] = jnp.zeros_like(acc)

        # First linear slice on this hidden tile: (tm, Dp) @ (Dp, th) + b1 slice.
        h = jnp.dot(x_ref[...], w1_ref[...], preferred_element_type=jnp.float32)
        h = h + b1_ref[...].astype(jnp.float32)
        if exact_gelu:
            # Exact (erf) GELU in f32, matching torch.nn.GELU(approximate='none').
            h = 0.5 * h * (1.0 + jax.lax.erf(h * 0.7071067811865476))
        else:
            # tanh-approximate GELU routes exp/tanh through the EUP slot and
            # overlaps with the MXU (deviates from torch's default numerics).
            h = jax.nn.gelu(h, approximate=True)
        # TODO(synk): dropout omitted — p=0.0 / eval mode makes it the identity.
        # Second linear partial sum into the resident accumulator.
        acc[...] += jnp.dot(h.astype(w2_ref.dtype), w2_ref[...],
                            preferred_element_type=jnp.float32)

        @pl.when(h_idx == pl.num_programs(1) - 1)
        def _finalize():
            # b2 is added exactly once, in the epilogue of the hidden reduction.
            o_ref[...] = (acc[...] + b2_ref[...].astype(jnp.float32)).astype(o_ref.dtype)

    return kernel


def _pad2d(a, rows, cols, dtype):
    """Zero-pad a 2-D array to (rows, cols) and cast; no copy if already there."""
    if a.shape == (rows, cols):
        return a if a.dtype == dtype else a.astype(dtype)
    out = jnp.zeros((rows, cols), dtype)
    return out.at[: a.shape[0], : a.shape[1]].set(a.astype(dtype))


@functools.partial(
    jax.jit, static_argnames=("tm", "th", "compute_dtype", "approximate_gelu"))
def feed_forward(x, w1, b1, w2, b2, *, tm=None, th=None,
                 compute_dtype=jnp.bfloat16, approximate_gelu=False):
    """x: (B, S, D). Math convention y = x @ W + b (W1: (D, H), W2: (H, D)).
    Output dtype == x.dtype; matmul operands run in compute_dtype."""
    B, S, D = x.shape
    H = w1.shape[1]
    M = B * S
    out_dtype = jnp.dtype(x.dtype)
    compute_dtype = jnp.dtype(compute_dtype)

    # --- chip-aware VMEM budget ---
    vmem_cap = 64 * 1024 * 1024            # conservative fallback (v7x per-TC)
    try:
        vmem_cap = int(pltpu.get_tpu_info().vmem_capacity_bytes)
    except Exception:
        pass
    vmem_budget = int(vmem_cap * 0.85)     # headroom for Mosaic internal scratch
    small_vmem_chip = vmem_cap <= 80 * 1024 * 1024   # v7x: 64 MiB/TC, 2 TCs

    # --- tile sizes (lane = 128; sublane packing depends on dtype width) ---
    cbytes = compute_dtype.itemsize
    obytes = out_dtype.itemsize
    sub = 8 if cbytes >= 4 else (16 if cbytes == 2 else 32)

    if tm is None:
        tm = 512 if small_vmem_chip else 1024
    if th is None:
        th = 256 if small_vmem_chip else 512
    tm = _round_up(max(tm, sub), sub)
    th = _round_up(max(th, 128), 128)

    Dp = _round_up(D, 128)                 # lane-dense minor dim
    tm_eff = min(tm, _round_up(M, sub))    # don't over-tile tiny problems
    th_eff = min(th, _round_up(H, 128))

    # v7x has 2 TensorCores: make sure the 'parallel' row axis exposes >= 2 tiles.
    if small_vmem_chip and M > sub and _round_up(M, tm_eff) // tm_eff < 2:
        half = _round_up((M + 1) // 2, sub)
        if half < tm_eff:
            tm_eff = half

    use_scratch = out_dtype != jnp.dtype(jnp.float32)
    bias_bytes = jnp.dtype(b1.dtype).itemsize

    def footprint(tm_e, th_e):
        return (2 * tm_e * Dp * cbytes          # x tile (double-buffered)
                + 2 * Dp * th_e * cbytes        # W1 column slab
                + 2 * th_e * Dp * cbytes        # W2 row slab
                + 2 * tm_e * Dp * obytes        # output tile
                + 2 * (th_e + Dp) * bias_bytes  # biases
                + tm_e * th_e * 4               # f32 GELU intermediate
                + (tm_e * Dp * 4 if use_scratch else 0))

    # Shrink tiles until the double-buffered footprint fits the chip.
    for _ in range(32):
        if footprint(tm_eff, th_eff) <= vmem_budget:
            break
        if th_eff > 128:
            th_eff = max(128, _round_up(th_eff // 2, 128))
        elif tm_eff > sub:
            tm_eff = max(sub, _round_up(tm_eff // 2, sub))
        else:
            break

    Mp = _round_up(M, tm_eff)
    Hp = _round_up(H, th_eff)

    # --- pad / cast operands (no-ops when shapes & dtypes already aligned) ---
    x_p = _pad2d(x.reshape(M, D), Mp, Dp, compute_dtype)
    w1_p = _pad2d(w1, Dp, Hp, compute_dtype)
    w2_p = _pad2d(w2, Hp, Dp, compute_dtype)
    b1_p = _pad2d(b1.reshape(1, H), 1, Hp, b1.dtype)
    b2_p = _pad2d(b2.reshape(1, D), 1, Dp, b2.dtype)

    tile_fp = footprint(tm_eff, th_eff)
    vmem_limit = int(min(vmem_budget, max(32 * 1024 * 1024, int(1.25 * tile_fp))))

    n_row_tiles = Mp // tm_eff
    cost = pl.CostEstimate(
        flops=4 * Mp * Dp * Hp,                  # two matmuls: 2*M*D*H each
        transcendentals=Mp * Hp,                 # erf/tanh per hidden activation
        bytes_accessed=(Mp * Dp * cbytes                         # x read
                        + n_row_tiles * 2 * Dp * Hp * cbytes     # weights streamed
                        + Mp * Dp * obytes),                     # output write
    )

    kernel = _make_ffn_kernel(use_scratch, not approximate_gelu)
    scratch_shapes = ([pltpu.VMEM((tm_eff, Dp), jnp.float32)]
                      if use_scratch else [])

    out_p = pl.pallas_call(
        kernel,
        out_shape=jax.ShapeDtypeStruct((Mp, Dp), out_dtype),
        grid_spec=pltpu.PrefetchScalarGridSpec(
            num_scalar_prefetch=0,
            grid=(Mp // tm_eff, Hp // th_eff),
            in_specs=[
                pl.BlockSpec((tm_eff, Dp), lambda i, h: (i, 0)),   # x tile
                pl.BlockSpec((Dp, th_eff), lambda i, h: (0, h)),   # W1 column slab
                pl.BlockSpec((1, th_eff), lambda i, h: (0, h)),    # b1 slice
                pl.BlockSpec((th_eff, Dp), lambda i, h: (h, 0)),   # W2 row slab
                pl.BlockSpec((1, Dp), lambda i, h: (0, 0)),        # b2
            ],
            out_specs=pl.BlockSpec((tm_eff, Dp), lambda i, h: (i, 0)),
            scratch_shapes=scratch_shapes,
        ),
        compiler_params=pltpu.CompilerParams(
            dimension_semantics=("parallel", "arbitrary"),
            vmem_limit_bytes=vmem_limit,
        ),
        cost_estimate=cost,
    )(x_p, w1_p, b1_p, w2_p, b2_p)

    if Mp == M and Dp == D:
        return out_p.reshape(B, S, D)
    return out_p[:M, :D].reshape(B, S, D)


def _reference(x, w1, b1, w2, b2, compute_dtype=jnp.float32):
    """Pure-JAX reference mirroring the kernel's dtype handling."""
    cd = jnp.dtype(compute_dtype)
    B, S, D = x.shape
    xf = x.reshape(-1, D).astype(cd)
    h = jnp.dot(xf, w1.astype(cd), preferred_element_type=jnp.float32) + b1
    h = jax.nn.gelu(h, approximate=False)
    y = jnp.dot(h.astype(cd), w2.astype(cd), preferred_element_type=jnp.float32) + b2
    return y.astype(x.dtype).reshape(B, S, D)


if __name__ == "__main__":
    # Small shapes consistent with the module: dim=32, hidden_dim=dim*4=128.
    B, S, D = 2, 8, 32
    H = D * 4

    key = jax.random.PRNGKey(0)
    kx, kw1, kb1, kw2, kb2 = jax.random.split(key, 5)

    x = jax.random.normal(kx, (B, S, D), dtype=jnp.float32)
    # Deterministic init (PyTorch-Linear-like uniform bounds).
    lim1 = 1.0 / jnp.sqrt(D)
    lim2 = 1.0 / jnp.sqrt(H)
    w1 = jax.random.uniform(kw1, (D, H), jnp.float32, -lim1, lim1)
    b1 = jax.random.uniform(kb1, (H,), jnp.float32, -lim1, lim1)
    w2 = jax.random.uniform(kw2, (H, D), jnp.float32, -lim2, lim2)
    b2 = jax.random.uniform(kb2, (D,), jnp.float32, -lim2, lim2)

    # Default fast path: bf16 MXU operands, f32 GELU / accumulation.
    out_bf16 = jax.block_until_ready(feed_forward(x, w1, b1, w2, b2))
    ref_bf16 = _reference(x, w1, b1, w2, b2, compute_dtype=jnp.bfloat16)
    assert out_bf16.shape == (B, S, D)
    assert jnp.allclose(out_bf16, ref_bf16, atol=5e-3, rtol=5e-3), "bf16 path mismatch"

    # Full-precision path: f32 operands, exact against the f32 reference.
    out_f32 = jax.block_until_ready(
        feed_forward(x, w1, b1, w2, b2, compute_dtype=jnp.float32))
    ref_f32 = _reference(x, w1, b1, w2, b2)
    assert jnp.allclose(out_f32, ref_f32, atol=1e-5, rtol=1e-5), "f32 path mismatch"

    print("KERNEL_OK")
</pallas_src>

<mosaic_0001>
module attributes {stable_mosaic.version = 11 : i64} {
  func.func @kernel(%arg0: i32, %arg1: i32, %arg2: memref<16x128xbf16, #tpu.memory_space<vmem>>, %arg3: memref<128x128xbf16, #tpu.memory_space<vmem>>, %arg4: memref<1x128xf32, #tpu.memory_space<vmem>>, %arg5: memref<128x128xbf16, #tpu.memory_space<vmem>>, %arg6: memref<1x128xf32, #tpu.memory_space<vmem>>, %arg7: memref<16x128xf32, #tpu.memory_space<vmem>>) attributes {dimension_semantics = [#tpu.dimension_semantics<parallel>, #tpu.dimension_semantics<arbitrary>], iteration_bounds = array<i64: 1, 1>, scalar_prefetch = 0 : i64, scratch_operands = 0 : i64, tpu.core_type = #tpu.core_type<tc>, window_params = [{transform_indices = @transform_0, window_bounds = array<i64: 16, 128>}, {transform_indices = @transform_1, window_bounds = array<i64: 128, 128>}, {transform_indices = @transform_2, window_bounds = array<i64: 1, 128>}, {transform_indices = @transform_3, window_bounds = array<i64: 128, 128>}, {pipeline_mode = #tpu.pipeline_mode<synchronous>, transform_indices = @transform_4, window_bounds = array<i64: 1, 128>}, {transform_indices = @transform_5, window_bounds = array<i64: 16, 128>}]} {
    %c0_i32 = arith.constant 0 : i32
    %0 = arith.cmpi eq, %arg1, %c0_i32 : i32
    %1 = arith.extui %0 : i1 to i32
    %c0_i32_0 = arith.constant 0 : i32
    %2 = arith.cmpi ne, %1, %c0_i32_0 : i32
    scf.if %2 {
      %cst_18 = arith.constant 0.000000e+00 : f32
      %26 = vector.broadcast %cst_18 : f32 to vector<16x128xf32>
      %c0_19 = arith.constant 0 : index
      %c0_20 = arith.constant 0 : index
      %27 = vector.load %arg7[%c0_19, %c0_20] : memref<16x128xf32, #tpu.memory_space<vmem>>, vector<16x128xf32>
      tpu.vector_store %arg7[%c0_19, %c0_20], %26 {strides = array<i32>} : memref<16x128xf32, #tpu.memory_space<vmem>>, vector<16x128xf32>,
    } else {
    }
    %c0 = arith.constant 0 : index
    %c0_1 = arith.constant 0 : index
    %3 = vector.load %arg2[%c0, %c0_1] : memref<16x128xbf16, #tpu.memory_space<vmem>>, vector<16x128xbf16>
    %c0_2 = arith.constant 0 : index
    %c0_3 = arith.constant 0 : index
    %4 = vector.load %arg3[%c0_2, %c0_3] : memref<128x128xbf16, #tpu.memory_space<vmem>>, vector<128x128xbf16>
    %cst = arith.constant dense<0.000000e+00> : vector<16x128xf32>
    %5 = tpu.matmul %3, %4, %cst {dimension_numbers = #tpu.dot_dimension_numbers<[1], [0], [0], [1], [0, 0, 1, 1], [], []>} : vector<16x128xbf16>, vector<128x128xbf16>, vector<16x128xf32> -> vector<16x128xf32>
    %c0_4 = arith.constant 0 : index
    %c0_5 = arith.constant 0 : index
    %6 = vector.load %arg4[%c0_4, %c0_5] : memref<1x128xf32, #tpu.memory_space<vmem>>, vector<1x128xf32>
    %7 = vector.broadcast %6 : vector<1x128xf32> to vector<16x128xf32>
    %8 = arith.addf %5, %7 : vector<16x128xf32>
    %cst_6 = arith.constant 5.000000e-01 : f32
    %9 = vector.broadcast %cst_6 : f32 to vector<16x128xf32>
    %10 = arith.mulf %9, %8 : vector<16x128xf32>
    %cst_7 = arith.constant 0.707106769 : f32
    %11 = vector.broadcast %cst_7 : f32 to vector<16x128xf32>
    %12 = arith.mulf %8, %11 : vector<16x128xf32>
    %13 = math.erf %12 : vector<16x128xf32>
    %cst_8 = arith.constant 1.000000e+00 : f32
    %14 = vector.broadcast %cst_8 : f32 to vector<16x128xf32>
    %15 = arith.addf %14, %13 : vector<16x128xf32>
    %16 = arith.mulf %10, %15 : vector<16x128xf32>
    %c0_9 = arith.constant 0 : index
    %c0_10 = arith.constant 0 : index
    %17 = vector.load %arg7[%c0_9, %c0_10] : memref<16x128xf32, #tpu.memory_space<vmem>>, vector<16x128xf32>
    %18 = arith.truncf %16 : vector<16x128xf32> to vector<16x128xbf16>
    %c0_11 = arith.constant 0 : index
    %c0_12 = arith.constant 0 : index
    %19 = vector.load %arg5[%c0_11, %c0_12] : memref<128x128xbf16, #tpu.memory_space<vmem>>, vector<128x128xbf16>
    %cst_13 = arith.constant dense<0.000000e+00> : vector<16x128xf32>
    %20 = tpu.matmul %18, %19, %cst_13 {dimension_numbers = #tpu.dot_dimension_numbers<[1], [0], [0], [1], [0, 0, 1, 1], [], []>} : vector<16x128xbf16>, vector<128x128xbf16>, vector<16x128xf32> -> vector<16x128xf32>
    %21 = arith.addf %17, %20 : vector<16x128xf32>
    %c0_14 = arith.constant 0 : index
    %c0_15 = arith.constant 0 : index
    %22 = vector.load %arg7[%c0_14, %c0_15] : memref<16x128xf32, #tpu.memory_space<vmem>>, vector<16x128xf32>
    tpu.vector_store %arg7[%c0_14, %c0_15], %21 {strides = array<i32>} : memref<16x128xf32, #tpu.memory_space<vmem>>, vector<16x128xf32>,
    %c0_i32_16 = arith.constant 0 : i32
    %23 = arith.cmpi eq, %arg1, %c0_i32_16 : i32
    %24 = arith.extui %23 : i1 to i32
    %c0_i32_17 = arith.constant 0 : i32
    %25 = arith.cmpi ne, %24, %c0_i32_17 : i32
    scf.if %25 {
      %c0_18 = arith.constant 0 : index
      %c0_19 = arith.constant 0 : index
      %26 = vector.load %arg7[%c0_18, %c0_19] : memref<16x128xf32, #tpu.memory_space<vmem>>, vector<16x128xf32>
      %c0_20 = arith.constant 0 : index
      %c0_21 = arith.constant 0 : index
      %27 = vector.load %arg6[%c0_20, %c0_21] : memref<1x128xf32, #tpu.memory_space<vmem>>, vector<1x128xf32>
      %28 = vector.broadcast %27 : vector<1x128xf32> to vector<16x128xf32>
      %29 = arith.addf %26, %28 : vector<16x128xf32>
      %c0_22 = arith.constant 0 : index
      %c0_23 = arith.constant 0 : index
      %30 = vector.load %arg7[%c0_22, %c0_23] : memref<16x128xf32, #tpu.memory_space<vmem>>, vector<16x128xf32>
      tpu.vector_store %arg7[%c0_22, %c0_23], %29 {strides = array<i32>} : memref<16x128xf32, #tpu.memory_space<vmem>>, vector<16x128xf32>,
    } else {
    }
    return
  }
  func.func @transform_0(%arg0: i32, %arg1: i32) -> (i32, i32) {
    %c0_i32 = arith.constant 0 : i32
    %c0_i32_0 = arith.constant 0 : i32
    return %arg0, %c0_i32 : i32, i32
  }
  func.func @transform_1(%arg0: i32, %arg1: i32) -> (i32, i32) {
    %c0_i32 = arith.constant 0 : i32
    %c0_i32_0 = arith.constant 0 : i32
    return %c0_i32, %arg1 : i32, i32
  }
  func.func @transform_2(%arg0: i32, %arg1: i32) -> (i32, i32) {
    %c0_i32 = arith.constant 0 : i32
    %c0_i32_0 = arith.constant 0 : i32
    return %c0_i32, %arg1 : i32, i32
  }
  func.func @transform_3(%arg0: i32, %arg1: i32) -> (i32, i32) {
    %c0_i32 = arith.constant 0 : i32
    %c0_i32_0 = arith.constant 0 : i32
    return %arg1, %c0_i32 : i32, i32
  }
  func.func @transform_4(%arg0: i32, %arg1: i32) -> (i32, i32) {
    %c0_i32 = arith.constant 0 : i32
    %c0_i32_0 = arith.constant 0 : i32
    %c0_i32_1 = arith.constant 0 : i32
    return %c0_i32, %c0_i32_0 : i32, i32
  }
  func.func @transform_5(%arg0: i32, %arg1: i32) -> (i32, i32) {
    %c0_i32 = arith.constant 0 : i32
    %c0_i32_0 = arith.constant 0 : i32
    return %arg0, %c0_i32 : i32, i32
  }
}

</mosaic_0001>

<bundles_post_ra>
// kernel: feed_forward.1
= control target key start
LH: loop header
LB: loop body
LE: loop exit
PB: predicated region body
PF: predicated region fallthrough
CT: control target
= control target key end

     0   :  { %v389_v0 = vmov 0.0   ;;  %vm390_vm0 = vmmov 0   ;;  %s484_s1 = inlined_call_operand.vmem [shape: bf16[128,128], index: 1, kind: input, shape index: {}]   ;;  %s485_s3 = inlined_call_operand.vmem [shape: bf16[128,128], index: 3, kind: input, shape index: {}]   ;;  %s486_s0 = inlined_call_operand.vmem [shape: bf16[16,128], index: 0, kind: input, shape index: {}]   ;;  %s487_s2 = inlined_call_operand.vmem [shape: f32[1,128], index: 2, kind: input, shape index: {}]   ;;  %s488_s4 = inlined_call_operand.vmem [shape: f32[1,128], index: 4, kind: input, shape index: {}]   ;;  %s489_s5 = inlined_call_operand.vmem [shape: f32[16,128], index: 5, kind: output, shape index: {}]  }
   0x1   :  { %326 = vmatprep.subr.bf16.mxu0 %v389_v0  ;;  %v368_v1 = vld [vmem:[%s484_s1] sm:$0xff]   ;;  %342 = vmatprep.mubr.msk.bf16.mxu0 %vm390_vm0, %v389_v0  ;;  %v369_v2 = vld [vmem:[%s484_s1 + $0x8] sm:$0xff]   ;;  %v370_v3 = vld [vmem:[%s484_s1 + $0x10] sm:$0xff]  }
   0x2   :  { %346 = vmatprep.subr.bf16.mxu1 %v389_v0  ;;  %362 = vmatprep.mubr.msk.bf16.mxu1 %vm390_vm0, %v389_v0  ;;  %v377_v4 = vld [vmem:[%s485_s3] sm:$0xff]   ;;  %v371_v5 = vld [vmem:[%s484_s1 + $0x18] sm:$0xff]   ;;  %v378_v6 = vld [vmem:[%s485_s3 + $0x8] sm:$0xff]  }
   0x3   :  { %327 = vmatpush3.bf16.msra.mxu0 %v368_v1  ;;  %347 = vmatpush3.bf16.msra.mxu1 %v377_v4  ;;  %v372_v7 = vld [vmem:[%s484_s1 + $0x20] sm:$0xff]   ;;  %v373_v8 = vld [vmem:[%s484_s1 + $0x28] sm:$0xff]   ;;  %v374_v9 = vld [vmem:[%s484_s1 + $0x30] sm:$0xff]  }
   0x4   :  { %328 = vmatprep.subr.bf16.mxu0 %v389_v0  ;;  %348 = vmatprep.subr.bf16.mxu1 %v389_v0  ;;  %v375_v10 = vld [vmem:[%s484_s1 + $0x38] sm:$0xff]   ;;  %v376_v11 = vld [vmem:[%s486_s0] sm:$0xff]   ;;  %v379_v12 = vld [vmem:[%s485_s3 + $0x10] sm:$0xff]  }
   0x5   :  { %v380_v13 = vld [vmem:[%s485_s3 + $0x18] sm:$0xff]   ;;  %v381_v14 = vld [vmem:[%s485_s3 + $0x20] sm:$0xff]   ;;  %v382_v15 = vld [vmem:[%s485_s3 + $0x28] sm:$0xff]  }
   0x6   :  { %v383_v16 = vld [vmem:[%s485_s3 + $0x30] sm:$0xff]   ;;  %v384_v17 = vld [vmem:[%s485_s3 + $0x38] sm:$0xff]   ;;  %v289_v18 = vld [vmem:[%s487_s2] ss:$0 sm:$0xff] }
   0x7   :  { %329 = vmatpush3.bf16.msra.mxu0 %v369_v2  ;;  %349 = vmatpush3.bf16.msra.mxu1 %v378_v6  ;;  %v307_v37 = vld [vmem:[%s488_s4] ss:$0 sm:$0xff] }
   0x8   :  { %330 = vmatprep.subr.bf16.mxu0 %v389_v0  ;;  %350 = vmatprep.subr.bf16.mxu1 %v389_v0 }
   0xb   :  { %331 = vmatpush3.bf16.msra.mxu0 %v370_v3  ;;  %351 = vmatpush3.bf16.msra.mxu1 %v379_v12 }
   0xc   :  { %332 = vmatprep.subr.bf16.mxu0 %v389_v0  ;;  %352 = vmatprep.subr.bf16.mxu1 %v389_v0 }
   0xf   :  { %333 = vmatpush3.bf16.msra.mxu0 %v371_v5  ;;  %353 = vmatpush3.bf16.msra.mxu1 %v380_v13 }
  0x10   :  { %334 = vmatprep.subr.bf16.mxu0 %v389_v0  ;;  %354 = vmatprep.subr.bf16.mxu1 %v389_v0 }
  0x13   :  { %335 = vmatpush3.bf16.msra.mxu0 %v372_v7  ;;  %355 = vmatpush3.bf16.msra.mxu1 %v381_v14 }
  0x14   :  { %336 = vmatprep.subr.bf16.mxu0 %v389_v0  ;;  %356 = vmatprep.subr.bf16.mxu1 %v389_v0 }
  0x17   :  { %337 = vmatpush3.bf16.msra.mxu0 %v373_v8  ;;  %357 = vmatpush3.bf16.msra.mxu1 %v382_v15 }
  0x18   :  { %338 = vmatprep.subr.bf16.mxu0 %v389_v0  ;;  %358 = vmatprep.subr.bf16.mxu1 %v389_v0 }
  0x1b   :  { %339 = vmatpush3.bf16.msra.mxu0 %v374_v9  ;;  %359 = vmatpush3.bf16.msra.mxu1 %v383_v16 }
  0x1c   :  { %340 = vmatprep.subr.bf16.mxu0 %v389_v0  ;;  %360 = vmatprep.subr.bf16.mxu1 %v389_v0 }
  0x1f   :  { %341 = vmatpush3.bf16.msra.mxu0 %v375_v10  ;;  %361 = vmatpush3.bf16.msra.mxu1 %v384_v17 }
  0x22   :  { %343 = vmatmul.mubr.bf16.vlgmr.msra.gmra.mrb[0].mxu0 %v376_v11 }
  0xf5   :  { %v140_v19 = vpop.f32.mrb[0].mxu0 }
  0xf6   :  { %v141_v20 = vadd.f32 %v289_v18, %v140_v19  ;;  %v344_v21 = vpop.f32.mrb[1].mxu0 }
  0xf7   :  { %v143_v22 = vpop.f32.mrb[2].mxu0 }
  0xf8   :  { %v149_v23 = vmul.f32 0.70710677, %v141_v20  ;;  %v144_v24 = vadd.f32 %v289_v18, %v143_v22  ;;  %v345_v25 = vpop.f32.mrb[3].mxu0  ;;  %v147_v30 = vmul.f32 0.5, %v141_v20 }
  0xfa   :  { %385 = verf.f32 %v149_v23  ;;  %v150_v26 = vmul.f32 0.70710677, %v144_v24  ;;  %v148_v31 = vmul.f32 0.5, %v144_v24 }
  0xfc   :  { %387 = verf.f32 %v150_v26 }
 0x104   :  { %v386_v27 = vpop.eup %385 }
 0x105   :  { %v153_v28 = vadd.f32 1.0, %v386_v27 }
 0x106   :  { %v388_v29 = vpop.eup %387 }
 0x107   :  { %v154_v32 = vadd.f32 1.0, %v388_v29  ;;  %v155_v33 = vmul.f32 %v153_v28, %v147_v30 }
 0x109   :  { %v156_v34 = vmul.f32 %v154_v32, %v148_v31 }
 0x10b   :  { %v159_v35 = vpack.c.bf16 %v156_v34, %v155_v33 }
 0x10d   :  { %363 = vmatmul.mubr.bf16.vlgmr.msra.gmra.mrb[0].mxu1 %v159_v35 }
 0x1e0   :  { %v258_v36 = vpop.f32.mrb[0].mxu1 }
 0x1e1   :  { %v364_v38 = vpop.f32.mrb[1].mxu1  ;;  %v281_v40 = vadd.f32 %v307_v37, %v258_v36 }
 0x1e2   :  { %v261_v39 = vpop.f32.mrb[2].mxu1 }
 0x1e3   :  { %v365_v41 = vpop.f32.mrb[3].mxu1  ;;  %283 = vst [vmem:[%s489_s5] sm:$0xff] %v281_v40  ;;  %v282_v42 = vadd.f32 %v307_v37, %v261_v39 }
 0x1e5   :  { %284 = vst [vmem:[%s489_s5 + $0x8] sm:$0xff] %v282_v42 }

</bundles_post_ra>
